<compile_context>
chip_gen: v5e
topology: v5e:2x2
jax: 0.10.0
libtpu: 0.0.40
codegen_flags: <defaults>
</compile_context>

<pallas_src>
import jax
import jax.numpy as jnp
import numpy as np
from jax.experimental import pallas as pl
from jax.experimental.pallas import tpu as pltpu


def _round_up(x, m):
    return ((x + m - 1) // m) * m


def _cdiv(a, b):
    return -(-a // b)


def adsh_loss_pallas(x_uw, x_us, w_cd, b, score, *, tb_max=256, tk_max=2048):
    """ADSH ssl loss.

    x_uw, x_us : [B, D] f32  weak / strong augmented flattened inputs
    w_cd       : [C, D] f32  classifier weight (PyTorch nn.Linear layout)
    b          : [1, C] f32  classifier bias
    score      : [1, C] f32  per-class rectification score (must be > 0)
    Returns a scalar f32 loss.
    """
    B, D = x_uw.shape
    C = w_cd.shape[0]

    # ---- batch tiling: prefer >= 2 tiles so v7x megacore gets both TCs busy --
    B8 = _round_up(B, 8)
    min_nb = 2 if B8 >= 16 else 1
    nb = max(min_nb, _cdiv(B8, tb_max))
    TB = _round_up(_cdiv(B8, nb), 8)
    B_pad = TB * nb
    need_row_mask = (B_pad != B)

    # ---- feature tiling: pad to the 128-lane grain only, split evenly --------
    D128 = _round_up(D, 128)
    nk = max(1, _cdiv(D128, tk_max))
    TK = _round_up(_cdiv(D128, nk), 128)
    D_pad = TK * nk

    # ---- wrapper prep --------------------------------------------------------
    # Activations stay f32 and un-copied in HBM when already aligned; padding
    # (the only wrapper-side materialization) only happens for awkward B/D.
    def maybe_pad(x):
        if B_pad == B and D_pad == D:
            return x
        return jnp.pad(x, ((0, B_pad - B), (0, D_pad - D)))

    xw = maybe_pad(x_uw)
    xs = maybe_pad(x_us)

    # Tiny per-class tensors: weight padded+bf16 (kept resident in VMEM),
    # bias and 1/score as f32.  These copies are negligible (C=10 rows).
    # NOTE: assumes C * D_pad * 2 bytes is small (true for a classifier head).
    wt = jnp.pad(w_cd, ((0, 0), (0, D_pad - D))).astype(jnp.bfloat16)   # (C, Dp)
    bias = b.astype(jnp.float32)                                        # (1, C)
    inv_score = (1.0 / score).astype(jnp.float32)                       # (1, C)

    def kernel(xw_ref, xs_ref, wt_ref, b_ref, invs_ref, out_ref,
               acc_uw, acc_us):
        k = pl.program_id(1)

        @pl.when(k == 0)
        def _():
            acc_uw[...] = jnp.zeros_like(acc_uw)
            acc_us[...] = jnp.zeros_like(acc_us)

        # Resident weight slab: slice the current K window (aligned to 128).
        off = pl.multiple_of(k * TK, 128)
        w_blk = wt_ref[:, pl.ds(off, TK)]                    # (C, TK) bf16

        # f32->bf16 cast on the VPU (free relative to DMA), bf16 MXU matmul,
        # f32 accumulation.  (TB, TK) @ (C, TK)^T -> (TB, C).
        acc_uw[...] += jax.lax.dot_general(
            xw_ref[...].astype(jnp.bfloat16), w_blk,
            dimension_numbers=(((1,), (1,)), ((), ())),
            preferred_element_type=jnp.float32)
        acc_us[...] += jax.lax.dot_general(
            xs_ref[...].astype(jnp.bfloat16), w_blk,
            dimension_numbers=(((1,), (1,)), ((), ())),
            preferred_element_type=jnp.float32)

        @pl.when(k == pl.num_programs(1) - 1)
        def _():
            logits_uw = acc_uw[...] + b_ref[...]             # (TB, C) f32
            logits_us = acc_us[...] + b_ref[...]

            # Weak branch: pseudo-label + confidence mask, division-free.
            m_uw = jnp.max(logits_uw, axis=1, keepdims=True)
            e_uw = jnp.exp(logits_uw - m_uw)
            s_uw = jnp.sum(e_uw, axis=1, keepdims=True)
            r_un = e_uw * invs_ref[...]                      # unnormalized rectify
            max_r = jnp.max(r_un, axis=1, keepdims=True)
            conf = (max_r >= s_uw).astype(jnp.float32)       # == (max_rp >= 1.0)

            class_ids = jax.lax.broadcasted_iota(jnp.int32, (TB, C), 1)
            rp_hat = jnp.min(jnp.where(r_un >= max_r, class_ids, C),
                             axis=1, keepdims=True)          # first argmax (torch)
            one_hot = (class_ids == rp_hat).astype(jnp.float32)

            # Strong branch: per-sample cross entropy vs pseudo-label.
            m_us = jnp.max(logits_us, axis=1, keepdims=True)
            lse = m_us + jnp.log(jnp.sum(jnp.exp(logits_us - m_us),
                                         axis=1, keepdims=True))
            picked = jnp.sum(logits_us * one_hot, axis=1, keepdims=True)
            ce = lse - picked                                # (TB, 1)

            contrib = ce * conf
            if need_row_mask:                                # zero padded batch rows
                row = (pl.program_id(0) * TB
                       + jax.lax.broadcasted_iota(jnp.int32, (TB, 1), 0))
                contrib = jnp.where(row < B, contrib, 0.0)

            # Reduce to a per-tile scalar and emit one unmasked, lane-dense
            # (8, 128) f32 block (scalar at [0, 0], zeros elsewhere).
            tile_sum = jnp.sum(contrib)
            r_id = jax.lax.broadcasted_iota(jnp.int32, (8, 128), 0)
            c_id = jax.lax.broadcasted_iota(jnp.int32, (8, 128), 1)
            out_ref[...] = jnp.where((r_id == 0) & (c_id == 0), tile_sum, 0.0)

    partials = pl.pallas_call(
        kernel,
        out_shape=jax.ShapeDtypeStruct((nb * 8, 128), jnp.float32),
        grid=(nb, nk),
        in_specs=[
            pl.BlockSpec((TB, TK), lambda i, k: (i, k)),      # weak x (f32)
            pl.BlockSpec((TB, TK), lambda i, k: (i, k)),      # strong x (f32)
            pl.BlockSpec((C, D_pad), lambda i, k: (0, 0)),    # resident weight (bf16)
            pl.BlockSpec((1, C), lambda i, k: (0, 0)),        # bias
            pl.BlockSpec((1, C), lambda i, k: (0, 0)),        # 1 / score
        ],
        out_specs=pl.BlockSpec((8, 128), lambda i, k: (i, 0)),
        scratch_shapes=[pltpu.VMEM((TB, C), jnp.float32),
                        pltpu.VMEM((TB, C), jnp.float32)],
        compiler_params=pltpu.CompilerParams(
            dimension_semantics=("parallel", "arbitrary"),
            vmem_limit_bytes=32 * 1024 * 1024),
    )(xw, xs, wt, bias, inv_score)

    # Mean over the TRUE batch size (padded rows already zeroed in-kernel).
    return jnp.sum(partials) / B


def adsh_loss_ref(x_uw, x_us, w_cd, b, score):
    """Pure-JAX reference mirroring the PyTorch forward."""
    hp = jax.lax.Precision.HIGHEST
    logits_uw = jnp.dot(x_uw, w_cd.T, precision=hp) + b
    probs = jax.nn.softmax(logits_uw, axis=1)
    rectify = probs / score
    max_rp = jnp.max(rectify, axis=1)
    rp_hat = jnp.argmax(rectify, axis=1)
    mask = (max_rp >= 1.0).astype(jnp.float32)
    logits_us = jnp.dot(x_us, w_cd.T, precision=hp) + b
    lse = jax.scipy.special.logsumexp(logits_us, axis=1)
    picked = jnp.take_along_axis(logits_us, rp_hat[:, None], axis=1)[:, 0]
    ce = lse - picked
    return jnp.mean(ce * mask)


if __name__ == "__main__":
    # Small shapes consistent with the forward: two NCHW image batches + scores.
    B, CH, H, Wd = 8, 4, 16, 16
    NUM_CLASSES = 10
    D = CH * H * Wd

    key = jax.random.PRNGKey(0)
    k_uw, k_us, k_w, k_b, k_s = jax.random.split(key, 5)

    inputs_uw = jax.random.normal(k_uw, (B, CH, H, Wd), dtype=jnp.float32)
    inputs_us = jax.random.normal(k_us, (B, CH, H, Wd), dtype=jnp.float32)

    # TODO(synk): the external `model` in ADSH.forward is arbitrary; it is
    # represented here by a deterministic flatten + linear classifier head.
    W_cd = jax.random.normal(k_w, (NUM_CLASSES, D), dtype=jnp.float32) * 0.05
    b_cls = jax.random.normal(k_b, (1, NUM_CLASSES), dtype=jnp.float32) * 0.1
    score = jax.random.uniform(k_s, (1, NUM_CLASSES), dtype=jnp.float32) * 0.8 + 0.2

    # Glue: NCHW -> [B, D] row-major flatten (same as torch .view(B, -1)).
    x_uw = inputs_uw.reshape(B, D)
    x_us = inputs_us.reshape(B, D)

    loss = adsh_loss_pallas(x_uw, x_us, W_cd, b_cls, score)
    jax.block_until_ready(loss)

    # Reference on the same bf16-rounded matmul operands the kernel consumes
    # (kernel casts x and w to bf16 for the MXU, accumulates in f32).
    xw = x_uw.astype(jnp.bfloat16).astype(jnp.float32)
    xs = x_us.astype(jnp.bfloat16).astype(jnp.float32)
    wr = W_cd.astype(jnp.bfloat16).astype(jnp.float32)
    loss_ref = adsh_loss_ref(xw, xs, wr, b_cls, score)
    np.testing.assert_allclose(np.asarray(loss), np.asarray(loss_ref),
                               rtol=1e-3, atol=1e-3)

    print("KERNEL_OK")
</pallas_src>

<mosaic_0001>
module attributes {stable_mosaic.version = 11 : i64} {
  func.func @kernel(%arg0: i32, %arg1: i32, %arg2: memref<8x1024xf32, #tpu.memory_space<vmem>>, %arg3: memref<8x1024xf32, #tpu.memory_space<vmem>>, %arg4: memref<10x1024xbf16, #tpu.memory_space<vmem>>, %arg5: memref<1x10xf32, #tpu.memory_space<vmem>>, %arg6: memref<1x10xf32, #tpu.memory_space<vmem>>, %arg7: memref<8x128xf32, #tpu.memory_space<vmem>>, %arg8: memref<8x10xf32, #tpu.memory_space<vmem>>, %arg9: memref<8x10xf32, #tpu.memory_space<vmem>>) attributes {dimension_semantics = [#tpu.dimension_semantics<parallel>, #tpu.dimension_semantics<arbitrary>], iteration_bounds = array<i64: 1, 1>, scalar_prefetch = 0 : i64, scratch_operands = 2 : i64, tpu.core_type = #tpu.core_type<tc>, window_params = [{transform_indices = @transform_0, window_bounds = array<i64: 8, 1024>}, {transform_indices = @transform_1, window_bounds = array<i64: 8, 1024>}, {pipeline_mode = #tpu.pipeline_mode<synchronous>, transform_indices = @transform_2, window_bounds = array<i64: 10, 1024>}, {pipeline_mode = #tpu.pipeline_mode<synchronous>, transform_indices = @transform_3, window_bounds = array<i64: 1, 10>}, {pipeline_mode = #tpu.pipeline_mode<synchronous>, transform_indices = @transform_4, window_bounds = array<i64: 1, 10>}, {transform_indices = @transform_5, window_bounds = array<i64: 8, 128>}]} {
    %c0_i32 = arith.constant 0 : i32
    %0 = arith.cmpi eq, %arg1, %c0_i32 : i32
    %1 = arith.extui %0 : i1 to i32
    %c0_i32_0 = arith.constant 0 : i32
    %2 = arith.cmpi ne, %1, %c0_i32_0 : i32
    scf.if %2 {
      %cst_16 = arith.constant 0.000000e+00 : f32
      %22 = vector.broadcast %cst_16 : f32 to vector<8x10xf32>
      %c0_17 = arith.constant 0 : index
      %c0_18 = arith.constant 0 : index
      %23 = vector.load %arg8[%c0_17, %c0_18] : memref<8x10xf32, #tpu.memory_space<vmem>>, vector<8x10xf32>
      tpu.vector_store %arg8[%c0_17, %c0_18], %22 {strides = array<i32>} : memref<8x10xf32, #tpu.memory_space<vmem>>, vector<8x10xf32>,
      %cst_19 = arith.constant 0.000000e+00 : f32
      %24 = vector.broadcast %cst_19 : f32 to vector<8x10xf32>
      %c0_20 = arith.constant 0 : index
      %c0_21 = arith.constant 0 : index
      %25 = vector.load %arg9[%c0_20, %c0_21] : memref<8x10xf32, #tpu.memory_space<vmem>>, vector<8x10xf32>
      tpu.vector_store %arg9[%c0_20, %c0_21], %24 {strides = array<i32>} : memref<8x10xf32, #tpu.memory_space<vmem>>, vector<8x10xf32>,
    } else {
    }
    %c1024_i32 = arith.constant 1024 : i32
    %3 = arith.muli %arg1, %c1024_i32 : i32
    %4 = tpu.assume_multiple %3, 128 : i32
    %c0 = arith.constant 0 : index
    %5 = arith.index_cast %4 : i32 to index
    %6 = vector.load %arg4[%c0, %5] : memref<10x1024xbf16, #tpu.memory_space<vmem>>, vector<10x1024xbf16>
    %c0_1 = arith.constant 0 : index
    %c0_2 = arith.constant 0 : index
    %7 = vector.load %arg8[%c0_1, %c0_2] : memref<8x10xf32, #tpu.memory_space<vmem>>, vector<8x10xf32>
    %c0_3 = arith.constant 0 : index
    %c0_4 = arith.constant 0 : index
    %8 = vector.load %arg2[%c0_3, %c0_4] : memref<8x1024xf32, #tpu.memory_space<vmem>>, vector<8x1024xf32>
    %9 = arith.truncf %8 : vector<8x1024xf32> to vector<8x1024xbf16>
    %cst = arith.constant dense<0.000000e+00> : vector<8x10xf32>
    %10 = tpu.matmul %9, %6, %cst {dimension_numbers = #tpu.dot_dimension_numbers<[1], [1], [0], [0], [0, 0, 1, 0], [], []>} : vector<8x1024xbf16>, vector<10x1024xbf16>, vector<8x10xf32> -> vector<8x10xf32>
    %11 = arith.addf %7, %10 : vector<8x10xf32>
    %c0_5 = arith.constant 0 : index
    %c0_6 = arith.constant 0 : index
    %12 = vector.load %arg8[%c0_5, %c0_6] : memref<8x10xf32, #tpu.memory_space<vmem>>, vector<8x10xf32>
    tpu.vector_store %arg8[%c0_5, %c0_6], %11 {strides = array<i32>} : memref<8x10xf32, #tpu.memory_space<vmem>>, vector<8x10xf32>,
    %c0_7 = arith.constant 0 : index
    %c0_8 = arith.constant 0 : index
    %13 = vector.load %arg9[%c0_7, %c0_8] : memref<8x10xf32, #tpu.memory_space<vmem>>, vector<8x10xf32>
    %c0_9 = arith.constant 0 : index
    %c0_10 = arith.constant 0 : index
    %14 = vector.load %arg3[%c0_9, %c0_10] : memref<8x1024xf32, #tpu.memory_space<vmem>>, vector<8x1024xf32>
    %15 = arith.truncf %14 : vector<8x1024xf32> to vector<8x1024xbf16>
    %cst_11 = arith.constant dense<0.000000e+00> : vector<8x10xf32>
    %16 = tpu.matmul %15, %6, %cst_11 {dimension_numbers = #tpu.dot_dimension_numbers<[1], [1], [0], [0], [0, 0, 1, 0], [], []>} : vector<8x1024xbf16>, vector<10x1024xbf16>, vector<8x10xf32> -> vector<8x10xf32>
    %17 = arith.addf %13, %16 : vector<8x10xf32>
    %c0_12 = arith.constant 0 : index
    %c0_13 = arith.constant 0 : index
    %18 = vector.load %arg9[%c0_12, %c0_13] : memref<8x10xf32, #tpu.memory_space<vmem>>, vector<8x10xf32>
    tpu.vector_store %arg9[%c0_12, %c0_13], %17 {strides = array<i32>} : memref<8x10xf32, #tpu.memory_space<vmem>>, vector<8x10xf32>,
    %c0_i32_14 = arith.constant 0 : i32
    %19 = arith.cmpi eq, %arg1, %c0_i32_14 : i32
    %20 = arith.extui %19 : i1 to i32
    %c0_i32_15 = arith.constant 0 : i32
    %21 = arith.cmpi ne, %20, %c0_i32_15 : i32
    scf.if %21 {
      %c0_16 = arith.constant 0 : index
      %c0_17 = arith.constant 0 : index
      %22 = vector.load %arg8[%c0_16, %c0_17] : memref<8x10xf32, #tpu.memory_space<vmem>>, vector<8x10xf32>
      %c0_18 = arith.constant 0 : index
      %c0_19 = arith.constant 0 : index
      %23 = vector.load %arg5[%c0_18, %c0_19] : memref<1x10xf32, #tpu.memory_space<vmem>>, vector<1x10xf32>
      %24 = vector.broadcast %23 : vector<1x10xf32> to vector<8x10xf32>
      %25 = arith.addf %22, %24 : vector<8x10xf32>
      %c0_20 = arith.constant 0 : index
      %c0_21 = arith.constant 0 : index
      %26 = vector.load %arg9[%c0_20, %c0_21] : memref<8x10xf32, #tpu.memory_space<vmem>>, vector<8x10xf32>
      %c0_22 = arith.constant 0 : index
      %c0_23 = arith.constant 0 : index
      %27 = vector.load %arg5[%c0_22, %c0_23] : memref<1x10xf32, #tpu.memory_space<vmem>>, vector<1x10xf32>
      %28 = vector.broadcast %27 : vector<1x10xf32> to vector<8x10xf32>
      %29 = arith.addf %26, %28 : vector<8x10xf32>
      %cst_24 = arith.constant dense<0xFF800000> : vector<8xf32>
      %30 = vector.multi_reduction <maximumf>, %25, %cst_24 [1] : vector<8x10xf32> to vector<8xf32>
      %31 = vector.shape_cast %30 : vector<8xf32> to vector<8x1xf32>
      %32 = vector.broadcast %31 : vector<8x1xf32> to vector<8x10xf32>
      %33 = arith.subf %25, %32 : vector<8x10xf32>
      %34 = math.exp %33 : vector<8x10xf32>
      %cst_25 = arith.constant dense<0.000000e+00> : vector<8xf32>
      %35 = vector.multi_reduction <add>, %34, %cst_25 [1] : vector<8x10xf32> to vector<8xf32>
      %36 = vector.shape_cast %35 : vector<8xf32> to vector<8x1xf32>
      %c0_26 = arith.constant 0 : index
      %c0_27 = arith.constant 0 : index
      %37 = vector.load %arg6[%c0_26, %c0_27] : memref<1x10xf32, #tpu.memory_space<vmem>>, vector<1x10xf32>
      %38 = vector.broadcast %37 : vector<1x10xf32> to vector<8x10xf32>
      %39 = arith.mulf %34, %38 : vector<8x10xf32>
      %cst_28 = arith.constant dense<0xFF800000> : vector<8xf32>
      %40 = vector.multi_reduction <maximumf>, %39, %cst_28 [1] : vector<8x10xf32> to vector<8xf32>
      %41 = vector.shape_cast %40 : vector<8xf32> to vector<8x1xf32>
      %42 = arith.cmpf oge, %41, %36 : vector<8x1xf32>
      %43 = arith.extui %42 : vector<8x1xi1> to vector<8x1xi32>
      %44 = arith.sitofp %43 : vector<8x1xi32> to vector<8x1xf32>
      %45 = tpu.iota {dimensions = array<i32: 1>} : vector<8x10xi32>
      %46 = vector.broadcast %41 : vector<8x1xf32> to vector<8x10xf32>
      %47 = arith.cmpf oge, %39, %46 : vector<8x10xf32>
      %c10_i32 = arith.constant 10 : i32
      %48 = vector.broadcast %c10_i32 : i32 to vector<8x10xi32>
      %49 = arith.select %47, %45, %48 : vector<8x10xi1>, vector<8x10xi32>
      %cst_29 = arith.constant dense<2147483647> : vector<8xi32>
      %50 = vector.multi_reduction <minsi>, %49, %cst_29 [1] : vector<8x10xi32> to vector<8xi32>
      %51 = vector.shape_cast %50 : vector<8xi32> to vector<8x1xi32>
      %52 = vector.broadcast %51 : vector<8x1xi32> to vector<8x10xi32>
      %53 = arith.cmpi eq, %45, %52 : vector<8x10xi32>
      %54 = arith.extui %53 : vector<8x10xi1> to vector<8x10xi32>
      %55 = arith.sitofp %54 : vector<8x10xi32> to vector<8x10xf32>
      %cst_30 = arith.constant dense<0xFF800000> : vector<8xf32>
      %56 = vector.multi_reduction <maximumf>, %29, %cst_30 [1] : vector<8x10xf32> to vector<8xf32>
      %57 = vector.shape_cast %56 : vector<8xf32> to vector<8x1xf32>
      %58 = vector.broadcast %57 : vector<8x1xf32> to vector<8x10xf32>
      %59 = arith.subf %29, %58 : vector<8x10xf32>
      %60 = math.exp %59 : vector<8x10xf32>
      %cst_31 = arith.constant dense<0.000000e+00> : vector<8xf32>
      %61 = vector.multi_reduction <add>, %60, %cst_31 [1] : vector<8x10xf32> to vector<8xf32>
      %62 = vector.shape_cast %61 : vector<8xf32> to vector<8x1xf32>
      %63 = math.log %62 : vector<8x1xf32>
      %64 = arith.addf %57, %63 : vector<8x1xf32>
      %65 = arith.mulf %29, %55 : vector<8x10xf32>
      %cst_32 = arith.constant dense<0.000000e+00> : vector<8xf32>
      %66 = vector.multi_reduction <add>, %65, %cst_32 [1] : vector<8x10xf32> to vector<8xf32>
      %67 = vector.shape_cast %66 : vector<8xf32> to vector<8x1xf32>
      %68 = arith.subf %64, %67 : vector<8x1xf32>
      %69 = arith.mulf %68, %44 : vector<8x1xf32>
      %70 = vector.shape_cast %69 : vector<8x1xf32> to vector<1x8x1xf32>
      %cst_33 = arith.constant dense<0.000000e+00> : vector<1xf32>
      %71 = vector.multi_reduction <add>, %70, %cst_33 [1, 2] : vector<1x8x1xf32> to vector<1xf32>
      %72 = vector.shape_cast %71 : vector<1xf32> to vector<1x1x1xf32>
      %73 = vector.extract %72[0, 0, 0] : f32 from vector<1x1x1xf32>
      %74 = tpu.iota {dimensions = array<i32: 0>} : vector<8x128xi32>
      %75 = tpu.iota {dimensions = array<i32: 1>} : vector<8x128xi32>
      %c0_i32_34 = arith.constant 0 : i32
      %76 = vector.broadcast %c0_i32_34 : i32 to vector<8x128xi32>
      %77 = arith.cmpi eq, %74, %76 : vector<8x128xi32>
      %c0_i32_35 = arith.constant 0 : i32
      %78 = vector.broadcast %c0_i32_35 : i32 to vector<8x128xi32>
      %79 = arith.cmpi eq, %75, %78 : vector<8x128xi32>
      %80 = arith.andi %77, %79 : vector<8x128xi1>
      %cst_36 = arith.constant 0.000000e+00 : f32
      %81 = vector.broadcast %73 : f32 to vector<8x128xf32>
      %82 = vector.broadcast %cst_36 : f32 to vector<8x128xf32>
      %83 = arith.select %80, %81, %82 : vector<8x128xi1>, vector<8x128xf32>
      %c0_37 = arith.constant 0 : index
      %c0_38 = arith.constant 0 : index
      %84 = vector.load %arg7[%c0_37, %c0_38] : memref<8x128xf32, #tpu.memory_space<vmem>>, vector<8x128xf32>
      tpu.vector_store %arg7[%c0_37, %c0_38], %83 {strides = array<i32>} : memref<8x128xf32, #tpu.memory_space<vmem>>, vector<8x128xf32>,
    } else {
    }
    return
  }
  func.func @transform_0(%arg0: i32, %arg1: i32) -> (i32, i32) {
    %c0_i32 = arith.constant 0 : i32
    return %arg0, %arg1 : i32, i32
  }
  func.func @transform_1(%arg0: i32, %arg1: i32) -> (i32, i32) {
    %c0_i32 = arith.constant 0 : i32
    return %arg0, %arg1 : i32, i32
  }
  func.func @transform_2(%arg0: i32, %arg1: i32) -> (i32, i32) {
    %c0_i32 = arith.constant 0 : i32
    %c0_i32_0 = arith.constant 0 : i32
    %c0_i32_1 = arith.constant 0 : i32
    return %c0_i32, %c0_i32_0 : i32, i32
  }
  func.func @transform_3(%arg0: i32, %arg1: i32) -> (i32, i32) {
    %c0_i32 = arith.constant 0 : i32
    %c0_i32_0 = arith.constant 0 : i32
    %c0_i32_1 = arith.constant 0 : i32
    return %c0_i32, %c0_i32_0 : i32, i32
  }
  func.func @transform_4(%arg0: i32, %arg1: i32) -> (i32, i32) {
    %c0_i32 = arith.constant 0 : i32
    %c0_i32_0 = arith.constant 0 : i32
    %c0_i32_1 = arith.constant 0 : i32
    return %c0_i32, %c0_i32_0 : i32, i32
  }
  func.func @transform_5(%arg0: i32, %arg1: i32) -> (i32, i32) {
    %c0_i32 = arith.constant 0 : i32
    %c0_i32_0 = arith.constant 0 : i32
    return %arg0, %c0_i32 : i32, i32
  }
}

</mosaic_0001>

<bundles_post_ra>
// kernel: tpu_custom_call.1
= control target key start
LH: loop header
LB: loop body
LE: loop exit
PB: predicated region body
PF: predicated region fallthrough
CT: control target
= control target key end

     0   :  { %10 = vsyncpa [#allocation5], 0  ;;  %s718_s0 = inlined_call_operand.hbm [shape: f32[8,1024], index: 0, kind: input, shape index: {}]   ;;  %s719_s1 = inlined_call_operand.hbm [shape: f32[8,1024], index: 1, kind: input, shape index: {}]   ;;  %s720_s2 = inlined_call_operand.hbm [shape: bf16[10,1024], index: 2, kind: input, shape index: {}]   ;;  %s721_s3 = inlined_call_operand.vmem [shape: f32[1,10], index: 3, kind: input, shape index: {}]   ;;  %s722_s4 = inlined_call_operand.vmem [shape: f32[1,10], index: 4, kind: input, shape index: {}]   ;;  %s723_s5 = inlined_call_operand.hbm [shape: f32[8,128], index: 5, kind: output, shape index: {}]  }
   0x1   :  { %11 = vsyncpa [#allocation8], 0  ;;  %s29_s20 = sshll.u32 %s719_s1, 4  ;;  %s30_s20 = int_to_ptr.hbm [resolvable:$true] %s29_s20 }
   0x2   :  { %12 = vsyncpa [#allocation6], 0  ;;  %s643_s21 = smov [#allocation7]   ;;  %s18_s25 = sshll.u32 %s718_s0, 4  ;;  %s19_s25 = int_to_ptr.hbm [resolvable:$true] %s18_s25 }
   0x3   :  { %s31_s22 = sshll.u32 %s643_s21, 4  ;;  %s644_s26 = smov [#allocation4]   ;;  %s32_s22 = int_to_ptr.vmem [resolvable:$true] %s31_s22 }
   0x4   :  { %34 = dma.hbm_to_vmem [thread:$0]  %s30_s20, 1024, %s32_s22, [#allocation8]  }
   0x5   :  { %s20_s27 = sshll.u32 %s644_s26, 4  ;;  %s39_s30 = sshll.u32 %s720_s2, 4  ;;  %s21_s27 = int_to_ptr.vmem [resolvable:$true] %s20_s27  ;;  %s40_s30 = int_to_ptr.hbm [resolvable:$true] %s39_s30 }
   0x6   :  { %23 = dma.hbm_to_vmem [thread:$0]  %s19_s25, 1024, %s21_s27, [#allocation5]  }
   0x7   :  { %s645_s1 = smov [#allocation9]   ;;  %s646_s7 = smov 512  }
   0x8   :  { %s41_s6 = sshll.u32 %s645_s1, 4  ;;  %s647_s8 = smov 32   ;;  %s42_s6 = int_to_ptr.vmem [resolvable:$true] %s41_s6 }
   0x9   :  { %47 = dma.hbm_to_vmem [thread:$0]  %s40_s30, 1024, %s42_s6, [#allocation8], %s646_s7, %s646_s7, %s647_s8  }
   0xa   :  { %637 = dma.done.wait [#allocation5], 1024  }
   0xb   :  { %638 = vsyncadd [#allocation5], 4294966272 }
   0xc   :  { %639 = dma.done.wait [#allocation8], 2048  }
   0xd   :  { %640 = vsyncadd [#allocation8], 4294965248  ;;  %v484_v0 = vld [vmem:[#allocation9] sm:$0xf]  ;;  %v516_v2 = vld [vmem:[#allocation9 + $0x4] sm:$0xf] }
   0xe   :  { %v520_v1 = vld [vmem:[#allocation9 + $0x1c] sm:$0x10]  ;;  %v486_v4 = vld [vmem:[#allocation9 + $0x20] sm:$0x10]  ;;  %v492_v5 = vld [vmem:[#allocation9 + $0x8] sm:$0xf] }
   0xf   :  { %v485_v3 = vor.u32 %v520_v1, %v484_v0  ;;  %v521_v6 = vld [vmem:[#allocation9 + $0x24] sm:$0x10]  ;;  %v489_v7 = vor.u32 %v516_v2, %v486_v4  ;;  %v517_v9 = vld [vmem:[#allocation9 + $0xc] sm:$0xf]  ;;  %v86_v11 = vld [vmem:[#allocation4] sm:$0xff]  ;;  %vm69_vm0 = vcmask 80896  }
  0x10   :  { %v493_v8 = vor.u32 %v521_v6, %v492_v5  ;;  %v494_v10 = vld [vmem:[#allocation9 + $0x28] sm:$0x10]  ;;  %v88_v14 = vld [vmem:[#allocation4 + $0x10] sm:$0xff]  ;;  %v89_v15 = vld [vmem:[#allocation4 + $0x18] sm:$0xff]  ;;  %v94_v23 = vpack.c.bf16 %v86_v11, %v86_v11  ;;  %v648_v40 = vmov 0.0   ;;  %vm443_vm5 = vcmask 7168  }
  0x11   :  { %149 = vmatpush.bf16.xpose.msra.mxu0 %v485_v3  ;;  %v497_v12 = vor.u32 %v517_v9, %v494_v10  ;;  %v87_v13 = vld [vmem:[#allocation4 + $0x8] sm:$0xff]  ;;  %162 = vmatpush.bf16.xpose.msra.mxu1 %v489_v7  ;;  %v508_v16 = vld [vmem:[#allocation9 + $0x18] sm:$0xf]  ;;  %v500_v18 = vld [vmem:[#allocation9 + $0x10] sm:$0xf]  ;;  %v96_v29 = vpack.c.bf16 %v88_v14, %v88_v14  ;;  %v97_v31 = vpack.c.bf16 %v89_v15, %v89_v15  ;;  %s469_s13 = sshll.u32 %s723_s5, 4  ;;  %s470_s13 = int_to_ptr.hbm [resolvable:$true] %s469_s13 }
  0x12   :  { %175 = vmatpush.bf16.xpose.msra.mxu2 %v493_v8  ;;  %v523_v17 = vld [vmem:[#allocation9 + $0x34] sm:$0x10]  ;;  %v522_v20 = vld [vmem:[#allocation9 + $0x2c] sm:$0x10]  ;;  %v519_v21 = vld [vmem:[#allocation9 + $0x1c] sm:$0xf]  ;;  %v95_v28 = vpack.c.bf16 %v87_v13, %v87_v13 }
  0x13   :  { %188 = vmatpush.bf16.xpose.msra.mxu3 %v497_v12  ;;  %v509_v19 = vor.u32 %v523_v17, %v508_v16  ;;  %v510_v22 = vld [vmem:[#allocation9 + $0x38] sm:$0x10]  ;;  %v501_v24 = vor.u32 %v522_v20, %v500_v18  ;;  %v518_v26 = vld [vmem:[#allocation9 + $0x14] sm:$0xf]  ;;  %v90_v32 = vld [vmem:[#allocation4 + $0x20] sm:$0xff]  ;;  %70 = vst.msk [vmem:[#allocation2] sm:$0xff] %vm69_vm0, %v648_v40 }
  0x14   :  { %v513_v25 = vor.u32 %v519_v21, %v510_v22  ;;  %v502_v27 = vld [vmem:[#allocation9 + $0x30] sm:$0x10]  ;;  %v91_v33 = vld [vmem:[#allocation4 + $0x28] sm:$0xff]  ;;  %v93_v35 = vld [vmem:[#allocation4 + $0x38] sm:$0xff]  ;;  %v98_v36 = vpack.c.bf16 %v90_v32, %v90_v32  ;;  %71 = vst.msk [vmem:[#allocation3] sm:$0xff] %vm69_vm0, %v648_v40 }
  0x15   :  { %v505_v30 = vor.u32 %v518_v26, %v502_v27  ;;  %v92_v34 = vld [vmem:[#allocation4 + $0x30] sm:$0xff]  ;;  %v99_v37 = vpack.c.bf16 %v91_v33, %v91_v33  ;;  %v101_v39 = vpack.c.bf16 %v93_v35, %v93_v35  ;;  %v250_v48 = vld [vmem:[#allocation7] sm:$0xff]  ;;  %v253_v49 = vld [vmem:[#allocation7 + $0x18] sm:$0xff] }
  0x16   :  { %v100_v38 = vpack.c.bf16 %v92_v34, %v92_v34  ;;  %v252_v47 = vld [vmem:[#allocation7 + $0x10] sm:$0xff]  ;;  %v258_v52 = vpack.c.bf16 %v250_v48, %v250_v48  ;;  %v261_v53 = vpack.c.bf16 %v253_v49, %v253_v49  ;;  %v251_v54 = vld [vmem:[#allocation7 + $0x8] sm:$0xff]  ;;  %v254_v0 = vld [vmem:[#allocation7 + $0x20] sm:$0xff] }
  0x17   :  { %v260_v51 = vpack.c.bf16 %v252_v47, %v252_v47  ;;  %v259_v55 = vpack.c.bf16 %v251_v54, %v251_v54  ;;  %v256_v63 = vld [vmem:[#allocation7 + $0x30] sm:$0xff]  ;;  %v257_v2 = vld [vmem:[#allocation7 + $0x38] sm:$0xff]  ;;  %v255_v20 = vld [vmem:[#allocation7 + $0x28] sm:$0xff] }
  0x18   :  { %150 = vmatmul.bf16.vlgmr.msra.gmra.mxu0 %v94_v23  ;;  %163 = vmatmul.bf16.vlgmr.msra.gmra.mxu1 %v95_v28  ;;  %v265_v11 = vpack.c.bf16 %v257_v2, %v257_v2  ;;  %v533_v16 = vld [vmem:[%s721_s3] ss:$0 sm:$0xff]  ;;  %v263_v21 = vpack.c.bf16 %v255_v20, %v255_v20 }
  0x19   :  { %201 = vmatpush.bf16.xpose.msrb.mxu0 %v501_v24  ;;  %214 = vmatpush.bf16.xpose.msrb.mxu1 %v505_v30 }
  0x1a   :  { %227 = vmatpush.bf16.xpose.msrb.mxu2 %v509_v19  ;;  %189 = vmatmul.bf16.vlgmr.msra.gmra.mxu3 %v97_v31  ;;  %v85_v9 = vld [vmem:[#allocation2] sm:$0xff] }
  0x1b   :  { %240 = vmatpush.bf16.xpose.msrb.mxu3 %v513_v25  ;;  %176 = vmatmul.bf16.vlgmr.msra.gmra.mxu2 %v96_v29 }
  0x21   :  { %273 = vmatpush.bf16.xpose.msra.mxu0 %v485_v3  ;;  %286 = vmatpush.bf16.xpose.msra.mxu1 %v489_v7  ;;  %v264_v7 = vpack.c.bf16 %v256_v63, %v256_v63 }
  0x22   :  { %299 = vmatpush.bf16.xpose.msra.mxu2 %v493_v8  ;;  %v262_v8 = vpack.c.bf16 %v254_v0, %v254_v0 }
  0x23   :  { %312 = vmatpush.bf16.xpose.msra.mxu3 %v497_v12 }
  0x28   :  { %202 = vmatmul.bf16.vlgmr.msrb.gmra.mxu0 %v98_v36  ;;  %215 = vmatmul.bf16.vlgmr.msrb.gmra.mxu1 %v99_v37  ;;  %v534_v37 = vld [vmem:[%s722_s4] ss:$0 sm:$0xff]  ;;  %s649_s4 = smov [#allocation10]  }
  0x29   :  { %325 = vmatpush.bf16.xpose.msrb.mxu0 %v501_v24  ;;  %338 = vmatpush.bf16.xpose.msrb.mxu1 %v505_v30  ;;  %s467_s10 = sshll.u32 %s649_s4, 4  ;;  %s468_s10 = int_to_ptr.vmem [resolvable:$true] %s467_s10 }
  0x2a   :  { %241 = vmatmul.bf16.vlgmr.msrb.gmra.mxu3 %v101_v39 }
  0x2b   :  { %228 = vmatmul.bf16.vlgmr.msrb.gmra.mxu2 %v100_v38  ;;  %364 = vmatpush.bf16.xpose.msrb.mxu3 %v513_v25 }
  0x2c   :  { %351 = vmatpush.bf16.xpose.msrb.mxu2 %v509_v19 }
  0x38   :  { %274 = vmatmul.bf16.vlgmr.msra.gmra.mxu0 %v258_v52  ;;  %287 = vmatmul.bf16.vlgmr.msra.gmra.mxu1 %v259_v55  ;;  %v249_v52 = vld [vmem:[#allocation3] sm:$0xff] }
  0x3a   :  { %313 = vmatmul.bf16.vlgmr.msra.gmra.mxu3 %v261_v53 }
  0x3b   :  { %300 = vmatmul.bf16.vlgmr.msra.gmra.mxu2 %v260_v51 }
  0x48   :  { %326 = vmatmul.bf16.vlgmr.msrb.gmra.mxu0 %v262_v8  ;;  %339 = vmatmul.bf16.vlgmr.msrb.gmra.mxu1 %v263_v21 }
  0x4a   :  { %365 = vmatmul.bf16.vlgmr.msrb.gmra.mxu3 %v265_v11 }
  0x4b   :  { %352 = vmatmul.bf16.vlgmr.msrb.gmra.mxu2 %v264_v7 }
  0x95   :  { %v151_v41 = vpop.f32.mrf.mxu0  ;;  %v164_v42 = vpop.f32.mrf.mxu1 }
  0x96   :  { %v165_v50 = vadd.f32 %v164_v42, %v151_v41 }
  0x9d   :  { %v190_v44 = vpop.f32.mrf.mxu3  ;;  %v153_v45 = vpop.f32.mrf.mxu0 }
  0x9e   :  { %v177_v43 = vpop.f32.mrf.mxu2  ;;  %v166_v46 = vpop.f32.mrf.mxu1 }
  0x9f   :  { %v178_v56 = vadd.f32 %v177_v43, %v165_v50 }
  0xa1   :  { %v191_v58 = vadd.f32 %v190_v44, %v178_v56  ;;  %v403_v56 = vlaneseq }
  0xa5   :  { %v192_v59 = vpop.f32.mrf.mxu3  ;;  %v203_v60 = vpop.f32.mrf.mxu0 }
  0xa6   :  { %v179_v57 = vpop.f32.mrf.mxu2  ;;  %v216_v61 = vpop.f32.mrf.mxu1  ;;  %v204_v62 = vadd.f32 %v203_v60, %v191_v58 }
  0xa7   :  { %v704_v57 = vand.u32 127, %v403_v56 }
  0xa8   :  { %v217_v1 = vadd.f32 %v216_v61, %v204_v62 }
  0xa9   :  { %vm457_vm7 = vcmp.eq.s32.totalorder %v704_v57, 0 }
  0xad   :  { %v242_v5 = vpop.f32.mrf.mxu3  ;;  %v205_v6 = vpop.f32.mrf.mxu0 }
  0xae   :  { %v229_v3 = vpop.f32.mrf.mxu2  ;;  %v218_v10 = vpop.f32.mrf.mxu1 }
  0xaf   :  { %v230_v4 = vadd.f32 %v229_v3, %v217_v1 }
  0xb1   :  { %v243_v12 = vadd.f32 %v242_v5, %v230_v4 }
  0xb3   :  { %v246_v13 = vadd.f32 %v243_v12, %v85_v9 }
  0xb5   :  { %248 = vst.msk [vmem:[#allocation2] sm:$0xff] %vm69_vm0, %v246_v13  ;;  %v244_v15 = vpop.f32.mrf.mxu3  ;;  %v275_v22 = vpop.f32.mrf.mxu0 }
  0xb6   :  { %v231_v14 = vpop.f32.mrf.mxu2  ;;  %v288_v23 = vpop.f32.mrf.mxu1 }
  0xb7   :  { %v289_v24 = vadd.f32 %v288_v23, %v275_v22 }
  0xbc   :  { %v375_v17 = vld [vmem:[#allocation2] sm:$0xff] }
  0xbd   :  { %v380_v18 = vadd.f32 %v533_v16, %v375_v17  ;;  %v314_v26 = vpop.f32.mrf.mxu3  ;;  %v277_v29 = vpop.f32.mrf.mxu0 }
  0xbe   :  { %v301_v25 = vpop.f32.mrf.mxu2  ;;  %v290_v30 = vpop.f32.mrf.mxu1 }
  0xbf   :  { %v383_v19 = vsel %vm69_vm0, %v380_v18, -inf  ;;  %v302_v27 = vadd.f32 %v301_v25, %v289_v24 }
  0xc0   :  { %384 = vmax.xlane.f32.xlu0 %v383_v19 }
  0xc1   :  { %v315_v28 = vadd.f32 %v314_v26, %v302_v27 }
  0xc5   :  { %v316_v34 = vpop.f32.mrf.mxu3  ;;  %v327_v36 = vpop.f32.mrf.mxu0 }
  0xc6   :  { %v303_v32 = vpop.f32.mrf.mxu2  ;;  %v328_v38 = vadd.f32 %v327_v36, %v315_v28  ;;  %v340_v49 = vpop.f32.mrf.mxu1  ;;  %v455_v36 = vshrl.u32 %v403_v56, 7 }
  0xc8   :  { %v341_v50 = vadd.f32 %v340_v49, %v328_v38  ;;  %vm456_vm6 = vcmp.eq.s32.totalorder %v455_v36, 0 }
  0xc9   :  { %vm458_vm8 = vmand %vm456_vm6, %vm457_vm7 }
  0xcd   :  { %v329_v43 = vpop.f32.mrf.mxu0  ;;  %v366_v46 = vpop.f32.mrf.mxu3 }
  0xce   :  { %v353_v45 = vpop.f32.mrf.mxu2  ;;  %v342_v55 = vpop.f32.mrf.mxu1 }
  0xcf   :  { %v354_v51 = vadd.f32 %v353_v45, %v341_v50 }
  0xd1   :  { %v367_v53 = vadd.f32 %v366_v46, %v354_v51 }
  0xd3   :  { %v370_v54 = vadd.f32 %v367_v53, %v249_v52 }
  0xd5   :  { %v368_v48 = vpop.f32.mrf.mxu3  ;;  %371 = vst.msk [vmem:[#allocation3] sm:$0xff] %vm69_vm0, %v370_v54 }
  0xd6   :  { %v355_v47 = vpop.f32.mrf.mxu2 }
  0xdc   :  { %v381_v63 = vld [vmem:[#allocation3] sm:$0xff] }
  0xdd   :  { %v382_v0 = vadd.f32 %v533_v16, %v381_v63 }
  0xdf   :  { %v425_v1 = vsel %vm69_vm0, %v382_v0, -inf }
 0x133   :  { %v385_v31 = vpop.xlane.xlu0 %384 }
 0x134   :  { %v386_v33 = vsub.f32 %v380_v18, %v385_v31 }
 0x136   :  { %v387_v35 = vmul.f32 1.442695, %v386_v33 }
 0x138   :  { %535 = vpow2.f32 %v387_v35 }
 0x13e   :  { %v536_v39 = vpop.eup %535 }
 0x13f   :  { %v396_v41 = vmul.f32 %v536_v39, %v534_v37  ;;  %v389_v44 = vsel %vm69_vm0, %v536_v39, 0.0 }
 0x141   :  { %v397_v42 = vsel %vm69_vm0, %v396_v41, -inf }
 0x142   :  { %398 = vmax.xlane.f32.xlu0 %v397_v42 }
 0x14a   :  { %390 = vadd.xlane.f32.xlu0 %v389_v44 }
 0x1b5   :  { %v399_v58 = vpop.xlane.xlu0 %398 }
 0x1b6   :  { %vm405_vm1 = vcmp.ge.f32.partialorder %v396_v41, %v399_v58 }
 0x1b7   :  { %v406_v59 = vsel %vm405_vm1, %v704_v57, 10 }
 0x1b8   :  { %v407_v60 = vsel %vm69_vm0, %v406_v59, 2147483647 }
 0x1b9   :  { %v409_v61 = vshra.s32 %v407_v60, 16  ;;  %v408_v2 = vand.u32 65535, %v407_v60 }
 0x1bb   :  { %v411_v62 = vcvt.s32.f32 %v409_v61  ;;  %v410_v4 = vcvt.s32.f32 %v408_v2 }
 0x1bd   :  { %412 = vmin.xlane.f32.xlu1 %v411_v62  ;;  %v391_v22 = vpop.xlane.xlu0 %390 }
 0x1be   :  { %vm400_vm4 = vcmp.ge.f32.partialorder %v399_v58, %v391_v22 }
 0x1bf   :  { %v514_v26 = vsel %vm400_vm4, 1.0, %v648_v40 }
 0x1c5   :  { %426 = vmax.xlane.f32.xlu1 %v425_v1 }
 0x230   :  { %v413_v3 = vpop.xlane.xlu1 %412 }
 0x231   :  { %vm414_vm2 = vcmp.eq.f32.partialorder %v411_v62, %v413_v3  ;;  %v419_v11 = vcvt.f32.s32 %v413_v3 }
 0x232   :  { %v415_v5 = vsel %vm414_vm2, %v410_v4, inf }
 0x233   :  { %416 = vmin.xlane.f32.xlu2 %v415_v5  ;;  %v420_v13 = vshll.u32 %v419_v11, 16 }
 0x238   :  { %v427_v6 = vpop.xlane.xlu1 %426 }
 0x239   :  { %v428_v7 = vsub.f32 %v382_v0, %v427_v6 }
 0x23b   :  { %v429_v8 = vmul.f32 1.442695, %v428_v7 }
 0x23d   :  { %537 = vpow2.f32 %v429_v8 }
 0x243   :  { %v538_v9 = vpop.eup %537 }
 0x244   :  { %v431_v10 = vsel %vm69_vm0, %v538_v9, 0.0 }
 0x245   :  { %432 = vadd.xlane.f32.xlu2 %v431_v10 }
 0x2a6   :  { %v417_v12 = vpop.xlane.xlu2 %416 }
 0x2a7   :  { %v418_v14 = vcvt.f32.s32 %v417_v12 }
 0x2a9   :  { %v421_v15 = vadd.s32 %v420_v13, %v418_v14 }
 0x2ab   :  { %vm422_vm3 = vcmp.eq.s32.totalorder %v704_v57, %v421_v15 }
 0x2ac   :  { %v515_v16 = vsel %vm422_vm3, 1.0, %v648_v40 }
 0x2ad   :  { %v437_v17 = vmul.f32 %v515_v16, %v382_v0 }
 0x2af   :  { %v438_v18 = vsel %vm69_vm0, %v437_v17, 0.0 }
 0x2b0   :  { %439 = vadd.xlane.f32.xlu1 %v438_v18 }
 0x2b8   :  { %v433_v19 = vpop.xlane.xlu2 %432 }
 0x2b9   :  { %539 = vlog2.f32 %v433_v19 }
 0x2bf   :  { %v540_v20 = vpop.eup %539 }
 0x2c0   :  { %v435_v21 = vmul.f32 0.6931472, %v540_v20 }
 0x2c2   :  { %v436_v23 = vadd.f32 %v435_v21, %v427_v6 }
 0x323   :  { %v440_v24 = vpop.xlane.xlu1 %439 }
 0x324   :  { %v441_v25 = vsub.f32 %v436_v23, %v440_v24 }
 0x326   :  { %v442_v27 = vmul.f32 %v514_v26, %v441_v25 }
 0x328   :  { %v444_v28 = vsel %vm443_vm5, %v442_v27, 0.0 }
 0x329   :  { %445 = vadd.xlane.f32.xlu2 %v444_v28 }
 0x39c   :  { %v446_v29 = vpop.xlane.xlu2 %445 }
 0x39d   :  { %v447_v30 = vrot.slane %v446_v29, 4 }
 0x39f   :  { %v448_v31 = vadd.f32 %v447_v30, %v446_v29 }
 0x3a1   :  { %v449_v32 = vrot.slane %v448_v31, 2 }
 0x3a3   :  { %v450_v33 = vadd.f32 %v449_v32, %v448_v31 }
 0x3a5   :  { %v451_v34 = vrot.slane %v450_v33, 1 }
 0x3a7   :  { %v452_v35 = vadd.f32 %v451_v34, %v450_v33 }
 0x3a9   :  { %524 = vpush %v452_v35 }
 0x3da   :  { %s525_s14 = spop %524 }
 0x3db   :  { %v459_v40 = vstv %s525_s14 }
 0x3dc   :  { %v460_v37 = vsel %vm458_vm8, %v459_v40, 0.0 }
 0x3dd   :  { %461 = vst [vmem:[#allocation10] sm:$0xff] %v460_v37 }
 0x3de   :  { %472 = dma.vmem_to_hbm [thread:$0]  %s468_s10, 128, %s470_s13, [#allocation6]  }
 0x3df   :  { %641 = dma.done.wait [#allocation6], 128  }
 0x3e0   :  { %642 = vsyncadd [#allocation6], 4294967168 }
 0x3e1   :  { %477 = vsyncpa [#allocation5], 1 }
 0x3e2   :  { %478 = vsyncpa [#allocation8], 1 }
 0x3e3   :  { %479 = vsyncpa [#allocation6], 1 }

</bundles_post_ra>
